<compile_context>
chip_gen: v7x
topology: tpu7x:2x2x1
jax: 0.10.0
libtpu: 0.0.40
codegen_flags: <defaults>
</compile_context>

<pallas_src>
import jax
import jax.numpy as jnp
from jax.experimental import pallas as pl
from jax.experimental.pallas import tpu as pltpu


# ---------------------------------------------------------------------------
# Kernel bodies
# ---------------------------------------------------------------------------

def _se_kernel_cf(x_ref, w1t_ref, b1_ref, w2t_ref, b2_ref, o_ref):
    """Single-pass, channels-first block: x (Bt, C, HW); spatial on lanes."""
    # Squeeze: f32 sum over the lane axis; 1/(H*W) is folded into w1t.
    y = jnp.sum(x_ref[...].astype(jnp.float32), axis=-1)              # (Bt, C)
    # Excite: FC -> ReLU -> FC -> sigmoid (tiny; hides under the DMA roofline).
    h = jnp.maximum(
        jnp.dot(y, w1t_ref[...], preferred_element_type=jnp.float32) + b1_ref[...],
        0.0)
    s = jax.nn.sigmoid(
        jnp.dot(h, w2t_ref[...], preferred_element_type=jnp.float32) + b2_ref[...])
    # Scale: second explicit ref read (keeps the big block out of long-lived temps).
    o_ref[...] = x_ref[...] * s[:, :, None].astype(o_ref.dtype)


def _se_kernel_cl(x_ref, w1t_ref, b1_ref, w2t_ref, b2_ref, o_ref):
    """Single-pass, channels-last block: x (Bt, HW, C); channels on lanes."""
    y = jnp.sum(x_ref[...].astype(jnp.float32), axis=1)               # (Bt, C)
    h = jnp.maximum(
        jnp.dot(y, w1t_ref[...], preferred_element_type=jnp.float32) + b1_ref[...],
        0.0)
    s = jax.nn.sigmoid(
        jnp.dot(h, w2t_ref[...], preferred_element_type=jnp.float32) + b2_ref[...])
    o_ref[...] = x_ref[...] * s[:, None, :].astype(o_ref.dtype)


def _se_reduce_gate_kernel(x_ref, w1t_ref, b1_ref, w2t_ref, b2_ref, g_ref, acc_ref):
    """Two-pass path, pass 1: accumulate spatial sums, emit the gate at the end.

    x_ref: (1, C, sc); g_ref: (1, C, 1) f32; acc_ref: (1, C) f32 scratch.
    Grid = (B, HW // sc); spatial (reduction) axis is last.
    """
    s_idx = pl.program_id(1)

    @pl.when(s_idx == 0)
    def _():
        acc_ref[...] = jnp.zeros_like(acc_ref)

    acc_ref[...] += jnp.sum(x_ref[...].astype(jnp.float32), axis=-1)

    @pl.when(s_idx == pl.num_programs(1) - 1)
    def _():
        y = acc_ref[...]                                               # (1, C)
        h = jnp.maximum(
            jnp.dot(y, w1t_ref[...], preferred_element_type=jnp.float32) + b1_ref[...],
            0.0)
        g = jax.nn.sigmoid(
            jnp.dot(h, w2t_ref[...], preferred_element_type=jnp.float32) + b2_ref[...])
        g_ref[...] = g[:, :, None]


def _se_scale_kernel(x_ref, g_ref, o_ref):
    """Two-pass path, pass 2: out = x * gate (gate broadcast over lanes)."""
    o_ref[...] = x_ref[...] * g_ref[...].astype(x_ref.dtype)


# ---------------------------------------------------------------------------
# Wrapper helpers
# ---------------------------------------------------------------------------

def _vmem_capacity_bytes():
    try:
        info = pltpu.get_tpu_info()
        cap = getattr(info, "vmem_capacity_bytes", None)
        if cap:
            return int(cap)
    except Exception:
        pass
    return 64 * 1024 * 1024  # conservative: v7x per-TensorCore VMEM


def _pick_batch_tile(B, per_image_bytes, target_block_bytes):
    """Largest divisor of B fitting the budget, with >= 2 grid steps when B >= 2
    so both v7x TensorCores get work under dimension_semantics=('parallel',)."""
    cap = max(1, B // 2) if B >= 2 else 1
    for d in range(cap, 0, -1):
        if B % d == 0 and d * per_image_bytes <= target_block_bytes:
            return d
    return 1


def se_layer_ref(x, w1, b1, w2, b2):
    """Pure-JAX reference matching the PyTorch module (also the rare fallback)."""
    y = jnp.mean(x.astype(jnp.float32), axis=(2, 3))                   # (B, C)
    h = jnp.maximum(y @ w1.T.astype(jnp.float32) + b1.astype(jnp.float32), 0.0)
    s = jax.nn.sigmoid(h @ w2.T.astype(jnp.float32) + b2.astype(jnp.float32))
    return x * s[:, :, None, None].astype(x.dtype)


# ---------------------------------------------------------------------------
# Single-pass path
# ---------------------------------------------------------------------------

def _se_single_pass(x, w1t, b1r, w2t, b2r, *, B, C, H, W, hidden, dtype,
                    per_image_bytes, weight_bytes, target_block_bytes,
                    vmem_ceiling, donate_x):
    HW = H * W
    itemsize = jnp.dtype(dtype).itemsize
    channels_last = (HW < 128) and (C >= 128)

    bt = _pick_batch_tile(B, per_image_bytes, target_block_bytes)
    block_bytes = bt * per_image_bytes
    vmem_limit = int(min(max(4 * block_bytes + weight_bytes + (2 << 20), 16 << 20),
                         vmem_ceiling))

    cost = pl.CostEstimate(
        flops=2 * B * C * HW + 4 * B * C * hidden,
        transcendentals=B * C,
        bytes_accessed=2 * B * C * HW * itemsize + weight_bytes,
    )
    compiler_params = pltpu.CompilerParams(
        dimension_semantics=("parallel",),          # megacore split on v7x
        vmem_limit_bytes=vmem_limit,
    )
    aliases = {0: 0} if donate_x else {}
    weight_specs = [
        pl.BlockSpec((C, hidden), lambda b: (0, 0)),   # W1^T with 1/(H*W) folded in
        pl.BlockSpec((1, hidden), lambda b: (0, 0)),   # b1
        pl.BlockSpec((hidden, C), lambda b: (0, 0)),   # W2^T
        pl.BlockSpec((1, C), lambda b: (0, 0)),        # b2
    ]

    if channels_last:
        # Small spatial map: put channels on lanes -> unmasked, lane-dense stores.
        x_src = jnp.transpose(x.reshape(B, C, HW), (0, 2, 1))          # (B, HW, C)
        out = pl.pallas_call(
            _se_kernel_cl,
            out_shape=jax.ShapeDtypeStruct((B, HW, C), dtype),
            grid=(B // bt,),
            in_specs=[pl.BlockSpec((bt, HW, C), lambda b: (b, 0, 0))] + weight_specs,
            out_specs=pl.BlockSpec((bt, HW, C), lambda b: (b, 0, 0)),
            compiler_params=compiler_params,
            cost_estimate=cost,
            input_output_aliases=aliases,
        )(x_src, w1t, b1r, w2t, b2r)
        return jnp.transpose(out, (0, 2, 1)).reshape(B, C, H, W)

    # Channels-first: no pad, no slice — block last-two dims equal (C, HW).
    x_src = x.reshape(B, C, HW)
    out = pl.pallas_call(
        _se_kernel_cf,
        out_shape=jax.ShapeDtypeStruct((B, C, HW), dtype),
        grid=(B // bt,),
        in_specs=[pl.BlockSpec((bt, C, HW), lambda b: (b, 0, 0))] + weight_specs,
        out_specs=pl.BlockSpec((bt, C, HW), lambda b: (b, 0, 0)),
        compiler_params=compiler_params,
        cost_estimate=cost,
        input_output_aliases=aliases,
    )(x_src, w1t, b1r, w2t, b2r)
    return out.reshape(B, C, H, W)


# ---------------------------------------------------------------------------
# Two-pass path (single image larger than the block budget)
# ---------------------------------------------------------------------------

def _se_two_pass(x, w1t, b1r, w2t, b2r, *, B, C, H, W, HW, hidden, dtype, sc,
                 weight_bytes, vmem_ceiling):
    n_s = HW // sc
    itemsize = jnp.dtype(dtype).itemsize
    block_bytes = C * sc * itemsize
    vmem_limit = int(min(max(4 * block_bytes + weight_bytes + (2 << 20), 16 << 20),
                         vmem_ceiling))
    x_flat = x.reshape(B, C, HW)

    # Pass 1: spatial-sum reduction per image + gate computation at the last step.
    gate = pl.pallas_call(
        _se_reduce_gate_kernel,
        out_shape=jax.ShapeDtypeStruct((B, C, 1), jnp.float32),
        grid=(B, n_s),
        in_specs=[
            pl.BlockSpec((1, C, sc), lambda b, s: (b, 0, s)),
            pl.BlockSpec((C, hidden), lambda b, s: (0, 0)),
            pl.BlockSpec((1, hidden), lambda b, s: (0, 0)),
            pl.BlockSpec((hidden, C), lambda b, s: (0, 0)),
            pl.BlockSpec((1, C), lambda b, s: (0, 0)),
        ],
        out_specs=pl.BlockSpec((1, C, 1), lambda b, s: (b, 0, 0)),
        scratch_shapes=[pltpu.VMEM((1, C), jnp.float32)],
        compiler_params=pltpu.CompilerParams(
            dimension_semantics=("parallel", "arbitrary"),
            vmem_limit_bytes=vmem_limit,
        ),
        cost_estimate=pl.CostEstimate(
            flops=B * C * HW + 4 * B * C * hidden,
            transcendentals=B * C,
            bytes_accessed=B * C * HW * itemsize + weight_bytes + B * C * 4,
        ),
    )(x_flat, w1t, b1r, w2t, b2r)

    # Pass 2: stream x again and scale by the per-channel gate.
    out = pl.pallas_call(
        _se_scale_kernel,
        out_shape=jax.ShapeDtypeStruct((B, C, HW), dtype),
        grid=(B, n_s),
        in_specs=[
            pl.BlockSpec((1, C, sc), lambda b, s: (b, 0, s)),
            pl.BlockSpec((1, C, 1), lambda b, s: (b, 0, 0)),
        ],
        out_specs=pl.BlockSpec((1, C, sc), lambda b, s: (b, 0, s)),
        compiler_params=pltpu.CompilerParams(
            dimension_semantics=("parallel", "parallel"),
            vmem_limit_bytes=vmem_limit,
        ),
        cost_estimate=pl.CostEstimate(
            flops=B * C * HW,
            transcendentals=0,
            bytes_accessed=2 * B * C * HW * itemsize + B * C * 4,
        ),
    )(x_flat, gate)
    return out.reshape(B, C, H, W)


# ---------------------------------------------------------------------------
# Public entry point
# ---------------------------------------------------------------------------

def se_layer(x, w1, b1, w2, b2, *, target_block_bytes=None, donate_x=False):
    """SELayer forward.

    x: (B, C, H, W) f32 or bf16.  PyTorch nn.Linear layout:
    w1: (C//r, C), b1: (C//r,), w2: (C, C//r), b2: (C,).
    """
    B, C, H, W = x.shape
    hidden = int(w1.shape[0])
    HW = H * W
    dtype = x.dtype
    itemsize = jnp.dtype(dtype).itemsize

    vmem_cap = _vmem_capacity_bytes()
    vmem_ceiling = int(0.85 * vmem_cap)
    if target_block_bytes is None:
        # v7x (64 MiB VMEM/TC) -> modest blocks; v5e/v6e (128 MiB) -> bigger blocks.
        target_block_bytes = (6 << 20) if vmem_cap <= (64 << 20) else (12 << 20)

    # Fold the 1/(H*W) mean normalization into W1^T; excite path stays f32.
    w1t = (jnp.asarray(w1, jnp.float32).T / float(HW))                 # (C, hidden)
    b1r = jnp.asarray(b1, jnp.float32).reshape(1, hidden)
    w2t = jnp.asarray(w2, jnp.float32).T                               # (hidden, C)
    b2r = jnp.asarray(b2, jnp.float32).reshape(1, C)
    weight_bytes = (C * hidden + hidden + hidden * C + C) * 4

    per_image_bytes = C * HW * itemsize

    if per_image_bytes <= target_block_bytes:
        return _se_single_pass(
            x, w1t, b1r, w2t, b2r, B=B, C=C, H=H, W=W, hidden=hidden, dtype=dtype,
            per_image_bytes=per_image_bytes, weight_bytes=weight_bytes,
            target_block_bytes=target_block_bytes, vmem_ceiling=vmem_ceiling,
            donate_x=donate_x)

    # A single image exceeds the block budget: chunk the spatial axis with a
    # lane-aligned (multiple of 128) exact divisor and run reduce-then-scale.
    sc = None
    for d in range(HW // 128, 0, -1):
        cand = d * 128
        if HW % cand == 0 and C * cand * itemsize <= target_block_bytes:
            sc = cand
            break
    if sc is None:
        # TODO(synk): ragged spatial chunking for huge images whose H*W is not a
        # multiple of 128; fall back to plain XLA for that rare case.
        return se_layer_ref(x, w1, b1, w2, b2)

    return _se_two_pass(
        x, w1t, b1r, w2t, b2r, B=B, C=C, H=H, W=W, HW=HW, hidden=hidden,
        dtype=dtype, sc=sc, weight_bytes=weight_bytes, vmem_ceiling=vmem_ceiling)


# ---------------------------------------------------------------------------
# Demo / correctness check
# ---------------------------------------------------------------------------

if __name__ == "__main__":
    def _run_case(name, *, B, C, H, W, reduction, dtype=jnp.float32, **kwargs):
        hidden = max(C // reduction, 1)
        key = jax.random.PRNGKey(0)
        kx, k1, kb1, k2, kb2 = jax.random.split(key, 5)
        x = jax.random.normal(kx, (B, C, H, W), dtype=jnp.float32).astype(dtype)
        # PyTorch nn.Linear weight layout: (out_features, in_features).
        w1 = jax.random.normal(k1, (hidden, C), dtype=jnp.float32) * 0.1
        b1 = jax.random.normal(kb1, (hidden,), dtype=jnp.float32) * 0.1
        w2 = jax.random.normal(k2, (C, hidden), dtype=jnp.float32) * 0.1
        b2 = jax.random.normal(kb2, (C,), dtype=jnp.float32) * 0.1

        out = jax.block_until_ready(se_layer(x, w1, b1, w2, b2, **kwargs))
        ref = se_layer_ref(x.astype(jnp.float32), w1, b1, w2, b2)
        tol = 1e-5 if dtype == jnp.float32 else 2e-2
        assert out.shape == (B, C, H, W), name
        assert jnp.allclose(out.astype(jnp.float32), ref, atol=tol, rtol=tol), (
            f"{name}: mismatch vs reference")

    # Channels-first single-pass path (spatial axis lane-dense).
    _run_case("cf_single_pass", B=4, C=64, H=16, W=16, reduction=16)
    # Channels-on-lanes path for a small 7x7 map with C = 128.
    _run_case("cl_small_hw", B=2, C=128, H=7, W=7, reduction=16)
    # Two-pass reduce-then-scale path (forced via a tiny block budget).
    _run_case("two_pass", B=2, C=32, H=16, W=16, reduction=8,
              target_block_bytes=16 * 1024)

    print("KERNEL_OK")
</pallas_src>

<mosaic_0001>
module attributes {stable_mosaic.version = 11 : i64} {
  func.func @_se_kernel_cf(%arg0: i32, %arg1: memref<2x64x256xf32, #tpu.memory_space<vmem>>, %arg2: memref<64x4xf32, #tpu.memory_space<vmem>>, %arg3: memref<1x4xf32, #tpu.memory_space<vmem>>, %arg4: memref<4x64xf32, #tpu.memory_space<vmem>>, %arg5: memref<1x64xf32, #tpu.memory_space<vmem>>, %arg6: memref<2x64x256xf32, #tpu.memory_space<vmem>>) attributes {dimension_semantics = [#tpu.dimension_semantics<parallel>], iteration_bounds = array<i64: 2>, scalar_prefetch = 0 : i64, scratch_operands = 0 : i64, tpu.core_type = #tpu.core_type<tc>, window_params = [{transform_indices = @transform_0, window_bounds = array<i64: 2, 64, 256>}, {pipeline_mode = #tpu.pipeline_mode<synchronous>, transform_indices = @transform_1, window_bounds = array<i64: 64, 4>}, {pipeline_mode = #tpu.pipeline_mode<synchronous>, transform_indices = @transform_2, window_bounds = array<i64: 1, 4>}, {pipeline_mode = #tpu.pipeline_mode<synchronous>, transform_indices = @transform_3, window_bounds = array<i64: 4, 64>}, {pipeline_mode = #tpu.pipeline_mode<synchronous>, transform_indices = @transform_4, window_bounds = array<i64: 1, 64>}, {transform_indices = @transform_5, window_bounds = array<i64: 2, 64, 256>}]} {
    %c0 = arith.constant 0 : index
    %c0_0 = arith.constant 0 : index
    %c0_1 = arith.constant 0 : index
    %0 = vector.load %arg1[%c0, %c0_0, %c0_1] : memref<2x64x256xf32, #tpu.memory_space<vmem>>, vector<2x64x256xf32>
    %cst = arith.constant dense<0.000000e+00> : vector<2x64xf32>
    %1 = vector.multi_reduction <add>, %0, %cst [2] : vector<2x64x256xf32> to vector<2x64xf32>
    %c0_2 = arith.constant 0 : index
    %c0_3 = arith.constant 0 : index
    %2 = vector.load %arg2[%c0_2, %c0_3] : memref<64x4xf32, #tpu.memory_space<vmem>>, vector<64x4xf32>
    %cst_4 = arith.constant dense<0.000000e+00> : vector<2x4xf32>
    %3 = tpu.matmul %1, %2, %cst_4 {dimension_numbers = #tpu.dot_dimension_numbers<[1], [0], [0], [1], [0, 0, 1, 1], [], []>} : vector<2x64xf32>, vector<64x4xf32>, vector<2x4xf32> -> vector<2x4xf32>
    %c0_5 = arith.constant 0 : index
    %c0_6 = arith.constant 0 : index
    %4 = vector.load %arg3[%c0_5, %c0_6] : memref<1x4xf32, #tpu.memory_space<vmem>>, vector<1x4xf32>
    %5 = vector.broadcast %4 : vector<1x4xf32> to vector<2x4xf32>
    %6 = arith.addf %3, %5 : vector<2x4xf32>
    %cst_7 = arith.constant 0.000000e+00 : f32
    %7 = vector.broadcast %cst_7 : f32 to vector<2x4xf32>
    %8 = arith.maximumf %6, %7 : vector<2x4xf32>
    %c0_8 = arith.constant 0 : index
    %c0_9 = arith.constant 0 : index
    %9 = vector.load %arg4[%c0_8, %c0_9] : memref<4x64xf32, #tpu.memory_space<vmem>>, vector<4x64xf32>
    %cst_10 = arith.constant dense<0.000000e+00> : vector<2x64xf32>
    %10 = tpu.matmul %8, %9, %cst_10 {dimension_numbers = #tpu.dot_dimension_numbers<[1], [0], [0], [1], [0, 0, 1, 1], [], []>} : vector<2x4xf32>, vector<4x64xf32>, vector<2x64xf32> -> vector<2x64xf32>
    %c0_11 = arith.constant 0 : index
    %c0_12 = arith.constant 0 : index
    %11 = vector.load %arg5[%c0_11, %c0_12] : memref<1x64xf32, #tpu.memory_space<vmem>>, vector<1x64xf32>
    %12 = vector.broadcast %11 : vector<1x64xf32> to vector<2x64xf32>
    %13 = arith.addf %10, %12 : vector<2x64xf32>
    %14 = arith.negf %13 : vector<2x64xf32>
    %15 = math.exp %14 : vector<2x64xf32>
    %cst_13 = arith.constant 1.000000e+00 : f32
    %16 = vector.broadcast %cst_13 : f32 to vector<2x64xf32>
    %17 = arith.addf %16, %15 : vector<2x64xf32>
    %18 = arith.divf %16, %17 : vector<2x64xf32>
    %c0_14 = arith.constant 0 : index
    %c0_15 = arith.constant 0 : index
    %c0_16 = arith.constant 0 : index
    %19 = vector.load %arg1[%c0_14, %c0_15, %c0_16] : memref<2x64x256xf32, #tpu.memory_space<vmem>>, vector<2x64x256xf32>
    %20 = vector.shape_cast %18 : vector<2x64xf32> to vector<2x64x1xf32>
    %21 = vector.broadcast %20 : vector<2x64x1xf32> to vector<2x64x256xf32>
    %22 = arith.mulf %19, %21 : vector<2x64x256xf32>
    %c0_17 = arith.constant 0 : index
    %c0_18 = arith.constant 0 : index
    %c0_19 = arith.constant 0 : index
    %23 = vector.load %arg6[%c0_17, %c0_18, %c0_19] : memref<2x64x256xf32, #tpu.memory_space<vmem>>, vector<2x64x256xf32>
    tpu.vector_store %arg6[%c0_17, %c0_18, %c0_19], %22 {strides = array<i32>} : memref<2x64x256xf32, #tpu.memory_space<vmem>>, vector<2x64x256xf32>,
    return
  }
  func.func @transform_0(%arg0: i32) -> (i32, i32, i32) {
    %c0_i32 = arith.constant 0 : i32
    %c0_i32_0 = arith.constant 0 : i32
    %c0_i32_1 = arith.constant 0 : i32
    return %arg0, %c0_i32, %c0_i32_0 : i32, i32, i32
  }
  func.func @transform_1(%arg0: i32) -> (i32, i32) {
    %c0_i32 = arith.constant 0 : i32
    %c0_i32_0 = arith.constant 0 : i32
    %c0_i32_1 = arith.constant 0 : i32
    return %c0_i32, %c0_i32_0 : i32, i32
  }
  func.func @transform_2(%arg0: i32) -> (i32, i32) {
    %c0_i32 = arith.constant 0 : i32
    %c0_i32_0 = arith.constant 0 : i32
    %c0_i32_1 = arith.constant 0 : i32
    return %c0_i32, %c0_i32_0 : i32, i32
  }
  func.func @transform_3(%arg0: i32) -> (i32, i32) {
    %c0_i32 = arith.constant 0 : i32
    %c0_i32_0 = arith.constant 0 : i32
    %c0_i32_1 = arith.constant 0 : i32
    return %c0_i32, %c0_i32_0 : i32, i32
  }
  func.func @transform_4(%arg0: i32) -> (i32, i32) {
    %c0_i32 = arith.constant 0 : i32
    %c0_i32_0 = arith.constant 0 : i32
    %c0_i32_1 = arith.constant 0 : i32
    return %c0_i32, %c0_i32_0 : i32, i32
  }
  func.func @transform_5(%arg0: i32) -> (i32, i32, i32) {
    %c0_i32 = arith.constant 0 : i32
    %c0_i32_0 = arith.constant 0 : i32
    %c0_i32_1 = arith.constant 0 : i32
    return %arg0, %c0_i32, %c0_i32_0 : i32, i32, i32
  }
}

</mosaic_0001>

<bundles_post_ra>
// kernel: tpu_custom_call.1
= control target key start
LH: loop header
LB: loop body
LE: loop exit
PB: predicated region body
PF: predicated region fallthrough
CT: control target
= control target key end

     0   :  { %10 = vsyncpa [#allocation3], 0  ;;  %s1526_s0 = inlined_call_operand.hbm [shape: f32[4,64,256], index: 0, kind: input, shape index: {}]   ;;  %s1527_s1 = inlined_call_operand.vmem [shape: f32[64,4], index: 1, kind: input, shape index: {}]   ;;  %s1528_s2 = inlined_call_operand.vmem [shape: f32[1,4], index: 2, kind: input, shape index: {}]   ;;  %s1529_s3 = inlined_call_operand.vmem [shape: f32[4,64], index: 3, kind: input, shape index: {}]   ;;  %s1530_s4 = inlined_call_operand.vmem [shape: f32[1,64], index: 4, kind: input, shape index: {}]   ;;  %s1531_s5 = inlined_call_operand.hbm [shape: f32[4,64,256], index: 5, kind: output, shape index: {}]  }
   0x1   :  { %12 = vsyncpa [#allocation3 + $0x1], 0 }
   0x2   :  { %13 = vsyncpa [#allocation4], 0 }
   0x3   :  { %15 = vsyncpa [#allocation4 + $0x1], 0  ;;  %s1108_s18 = smov 0   ;;  %s1110_s19 = smov 0  }
   0x4   :  { %s1112_s20 = smov 0   ;;  %s1114_s21 = smov 0  }
   0x5 LB: > { %s1129_s22 = sadd.s32 4294967295, %s1067_s21   ;;  %s841_s23 = sadd.s32 4294967294, %s1067_s21   ;;  %s1067_s21 = sphi %s1114_s21, %s1556_s21   ;;  %s1063_s20 = sphi %s1112_s20, %s1555_s20   ;;  %s1059_s19 = sphi %s1110_s19, %s1554_s19   ;;  %s1055_s18 = sphi %s1108_s18, %s1553_s18  }
   0x6   : > { %s1133_s24 = sadd.s32 1, %s1067_s21   ;;  %s28_s25 = sadd.s32 1, %s1063_s20 }
   0x7   : > { %s25_s26 = ssub.s32 %s1067_s21, %s1133_s24  ;;  %p35_p0 = scmp.ne.s32.totalorder %s1063_s20, %s1059_s19 }
   0x8   : > { %p26_p1 = scmp.eq.s32.totalorder %s25_s26, 0  ;;  %p36_p2 = scmp.eq.s32.totalorder %s1067_s21, 0 }
   0x9   : > { %p41_p3 = scmp.ne.s32.totalorder %s1059_s19, %s1055_s18  ;;  %p42_p4 = scmp.eq.s32.totalorder %s1129_s22, 0 }
   0xa   : > { %s1145_s27 = scalar_select %p26_p1, %s1063_s20, %s28_s25  }
   0xb   : > { %p1147_p5 = por %p36_p2, %p35_p0  ;;  %p1151_p6 = por %p42_p4, %p41_p3 }
   0xc   : > { %p149_p7 = scmp.eq.s32.totalorder %s1129_s22, 1  ;;  %p155_p8 = scmp.eq.s32.totalorder %s841_s23, 1 }
   0xd   : > { %p926_p10 = scmp.lt.s32.totalorder %s1067_s21, 2  ;;  %s187_s7 = sand.u32 1, %s1063_s20  }
   0xe   : > { %p1158_p11 = por %p149_p7, %p35_p0  ;;  %p1162_p12 = por %p155_p8, %p41_p3 }
   0xf   : > { %s864_s8 = sshll.u32 %s1067_s21, 12  ;;  %s844_s9 = sshll.u32 %s187_s7, 8 }
  0x10   : > { %s1539_s30 = scalar_select %p1158_p11, 1, 0 }
  0x11   : > { %s1540_s6 = scalar_select %p1162_p12, 1, 0 }
  0x12   : > { %s1171_s12 = scalar_lea.hbm %s1526_s0, %s864_s8  ;;  %s191_s13 = scalar_lea.vmem [#allocation2], %s844_s9 }
  0x13   : > { %s199_s14 = sshll.u32 %s191_s13, 4  ;;  %p1175_p13 = pnand %p926_p10, %p1147_p5  ;;  %s1179_s14 = int_to_ptr.vmem [resolvable:$true] %s199_s14 }
  0x14   : > { %s1181_s16 = scalar_lea.sflag [#allocation3], %s187_s7  ;;  %s971_s17 = scalar_lea.hbm %s1171_s12, 4096 }
  0x15   : > { %p972_p0 = scmp.ne.s32.totalorder %s1171_s12, %s971_s17  ;;  %p973_p1 = pneg %p1175_p13 }
  0x16   : > { %s976_s26 = scalar_lea.hbm %s1526_s0, 8192  ;;  %p977_p4 = scmp.lt.u32.totalorder %s1171_s12, %s1526_s0 }
  0x17   : > { %p974_p2 = pnand %p973_p1, %p972_p0  ;;  %p978_p5 = scmp.lt.u32.totalorder %s976_s26, %s971_s17 }
  0x18   : > { %p980_p8 = scmp.lt.u32.totalorder %s971_s17, %s1171_s12 }
  0x19   : > { %p975_p3 = pneg %p974_p2  ;;  %p979_p7 = por %p978_p5, %p977_p4 }
  0x1b   : > { %p981_p10 = por %p980_p8, %p979_p7 }
  0x1d   : > { %p982_p9 = pnand %p981_p10, %p975_p3 }
  0x1f   : > { %985 = shalt.err (!%p982_p9)
}
  0x20   : > { %s986_s7 = scalar_lea.vmem %s1179_s14, 4096  ;;  %s1069_s9 = smov [#allocation2]  }
  0x21   : > { %p987_p0 = scmp.ne.s32.totalorder %s1179_s14, %s986_s7  ;;  %s991_s10 = sshll.u32 %s1069_s9, 4  ;;  %s992_s10 = int_to_ptr.vmem [resolvable:$false] %s991_s10 }
  0x22   : > { %s993_s11 = scalar_lea.vmem %s992_s10, 8192  ;;  %p994_p11 = scmp.lt.s32.totalorder %s1179_s14, %s992_s10 }
  0x23   : > { %p989_p2 = pnand %p987_p0, %p973_p1  ;;  %p995_p4 = scmp.lt.s32.totalorder %s993_s11, %s986_s7 }
  0x25   : > { %p990_p12 = pneg %p989_p2  ;;  %p996_p5 = por %p995_p4, %p994_p11 }
  0x27   : > { %p997_p7 = pnand %p996_p5, %p990_p12 }
  0x29   : > { %1000 = shalt.err (!%p997_p7)
}
  0x2a   : > { %s1070_s13 = smov 256   ;;  %s1071_s17 = smov 16  }
  0x2b   : > { %921 = dma.hbm_to_vmem [thread:$0]  (!%p1175_p13), %s1171_s12, 4096, %s1179_s14, %s1181_s16, %s1070_s13, %s1070_s13, %s1071_s17  }
  0x2c   : > { %p848_p9 = scmp.ge.s32.totalorder %s1067_s21, 1  ;;  %p207_p1 = scmp.lt.s32.totalorder %s1067_s21, 3 }
  0x2e   : > { %p208_p3 = pnand %p848_p9, %p207_p1 }
  0x30   : > { %211 = sbr.rel (%p208_p3) target bundleno = 859 (0x35b), region = 40 }
  0x37   : > { %s1212_s23 = sand.u32 1, %s1059_s19  }
  0x38   : > { %s849_s25 = sshll.u32 %s1212_s23, 8  ;;  %s214_s26 = scalar_lea.sflag [#allocation3], %s1212_s23 }
  0x39   : > { %s1218_s28 = scalar_lea.vmem [#allocation2], %s849_s25 }
  0x3a   : > { %1046 = dma.done.wait (%p1151_p6), %s214_s26, 4096  }
  0x3b   : > { %1048 = vsyncadd (%p1151_p6), %s214_s26, 4294963200  ;;  %v1225_v0 = vld [vmem:[%s1218_s28 + $0x80] sm:$0xff]  ;;  %v1228_v1 = vld [vmem:[%s1218_s28 + $0x88] sm:$0xff]  ;;  %v1072_v51 = vmov 0.0|0.0   ;;  %vm1073_vm0 = vmmov 0   ;;  %v1074_v61 = vmov 0.0  }
  0x3c   : > { %v1231_v2 = vld [vmem:[%s1218_s28] sm:$0xff]  ;;  %v302_v3 = vadd.f32 %v1228_v1, %v1225_v0  ;;  %v1236_v4 = vld [vmem:[%s1218_s28 + $0x8] sm:$0xff]  ;;  %v1239_v5 = vld [vmem:[%s1218_s28 + $0x90] sm:$0xff]  ;;  %902 = vmatprep.subr.bf16.mxu0 %v1072_v51  ;;  %894 = vmatprep.mubr.msk.f32.mxu0 %vm1073_vm0, %v1074_v61  ;;  %vm368_vm1 = vcmask 130112   ;;  %vm375_vm2 = vcmask 195712   ;;  %vm382_vm3 = vcmask 261312  }
  0x3d   : > { %v1242_v6 = vld [vmem:[%s1218_s28 + $0x98] sm:$0xff]  ;;  %v278_v7 = vadd.f32 %v1236_v4, %v1231_v2  ;;  %v1247_v8 = vld [vmem:[%s1218_s28 + $0x10] sm:$0xff]  ;;  %v1257_v12 = vld [vmem:[%s1218_s28 + $0xa0] sm:$0xff]  ;;  %897 = vmatprep.subr.mxu1 %v1074_v61  ;;  %899 = vmatprep.mubr.msk.f32.mxu1 %vm1073_vm0, %v1074_v61  ;;  %vm389_vm4 = vcmask 326912   ;;  %vm396_vm5 = vcmask 392512   ;;  %vm403_vm6 = vcmask 458112  }
  0x3e   : > { %v1250_v9 = vld [vmem:[%s1218_s28 + $0x18] sm:$0xff]  ;;  %303 = vadd.xlane.f32.xlu1 %v302_v3  ;;  %v305_v10 = vadd.f32 %v1242_v6, %v1239_v5  ;;  %v1260_v13 = vld [vmem:[%s1218_s28 + $0xa8] sm:$0xff]  ;;  %v1263_v14 = vld [vmem:[%s1218_s28 + $0x20] sm:$0xff]  ;;  %vm410_vm7 = vcmask 523712   ;;  %vm451_vm8 = vcmask 1041409   ;;  %vm453_vm9 = vcmask 523264  }
  0x3f   : > { %279 = vadd.xlane.f32.xlu0 %v278_v7  ;;  %v281_v11 = vadd.f32 %v1250_v9, %v1247_v8  ;;  %v1266_v15 = vld [vmem:[%s1218_s28 + $0x28] sm:$0xff]  ;;  %v308_v16 = vadd.f32 %v1260_v13, %v1257_v12  ;;  %v1273_v18 = vld [vmem:[%s1218_s28 + $0xb0] sm:$0xff]  ;;  %v1276_v19 = vld [vmem:[%s1218_s28 + $0xb8] sm:$0xff]  ;;  %vm539_vm10 = vcmask 1043456   ;;  %vm535_vm11 = vcmask 31744   ;;  %s1413_s10 = scalar_lea.vmem [#allocation5], %s849_s25 }
  0x40   : > { %v284_v17 = vadd.f32 %v1266_v15, %v1263_v14  ;;  %v1279_v20 = vld [vmem:[%s1218_s28 + $0x30] sm:$0xff]  ;;  %v1282_v21 = vld [vmem:[%s1218_s28 + $0x38] sm:$0xff]  ;;  %v311_v22 = vadd.f32 %v1276_v19, %v1273_v18  ;;  %v1289_v24 = vld [vmem:[%s1218_s28 + $0xc0] sm:$0xff]  ;;  %s866_s25 = sshll.u32 %s1129_s22, 12  ;;  %s768_s11 = sshll.u32 %s1413_s10, 4  ;;  %s1478_s11 = int_to_ptr.vmem [resolvable:$true] %s768_s11 }
  0x41   : > { %v287_v23 = vadd.f32 %v1282_v21, %v1279_v20  ;;  %v1292_v25 = vld [vmem:[%s1218_s28 + $0xc8] sm:$0xff]  ;;  %v1295_v26 = vld [vmem:[%s1218_s28 + $0x40] sm:$0xff]  ;;  %v1305_v30 = vld [vmem:[%s1218_s28 + $0xd0] sm:$0xff]  ;;  %s1476_s26 = scalar_lea.hbm %s1531_s5, %s866_s25  ;;  %s754_s22 = scalar_lea.sflag [#allocation4], %s1212_s23 }
  0x42   : > { %306 = vadd.xlane.f32.xlu1 %v305_v10  ;;  %v1298_v27 = vld [vmem:[%s1218_s28 + $0x48] sm:$0xff]  ;;  %v314_v28 = vadd.f32 %v1292_v25, %v1289_v24  ;;  %1542 = vst [vmem:[#allocation8_spill] sm:$0xff] %v1305_v30  ;;  %v1308_v31 = vld [vmem:[%s1218_s28 + $0xd8] sm:$0xff]  ;;  %v1311_v32 = vld [vmem:[%s1218_s28 + $0x50] sm:$0xff]  ;;  %v357_v10 = vlaneseq  ;;  %p1550_p11 = scmp.ne.s32.totalorder %s1539_s30, 0  ;;  %s1075_s29 = smov [#allocation5]  }
  0x43   : > { %282 = vadd.xlane.f32.xlu0 %v281_v11  ;;  %v290_v29 = vadd.f32 %v1298_v27, %v1295_v26  ;;  %1543 = vst [vmem:[#allocation9_spill] sm:$0xff] %v1308_v31  ;;  %v1314_v33 = vld [vmem:[%s1218_s28 + $0x58] sm:$0xff]  ;;  %v317_v34 = vadd.f32 %v1308_v31, %v1305_v30  ;;  %v1321_v36 = vld [vmem:[%s1218_s28 + $0xe0] sm:$0xff]  ;;  %v1324_v37 = vld [vmem:[%s1218_s28 + $0xe8] sm:$0xff]  ;;  %s1005_s12 = sshll.u32 %s1075_s29, 4  ;;  %s1006_s12 = int_to_ptr.vmem [resolvable:$false] %s1005_s12 }
  0x44   : > { %v293_v35 = vadd.f32 %v1314_v33, %v1311_v32  ;;  %v1327_v38 = vld [vmem:[%s1218_s28 + $0x60] sm:$0xff]  ;;  %v1330_v39 = vld [vmem:[%s1218_s28 + $0x68] sm:$0xff]  ;;  %v320_v40 = vadd.f32 %v1324_v37, %v1321_v36  ;;  %v1337_v42 = vld [vmem:[%s1218_s28 + $0xf0] sm:$0xff]  ;;  %s1007_s14 = scalar_lea.vmem %s1006_s12, 8192  ;;  %p1008_p8 = scmp.lt.s32.totalorder %s1478_s11, %s1006_s12 }
  0x45   : > { %v296_v41 = vadd.f32 %v1330_v39, %v1327_v38  ;;  %1544 = vst [vmem:[#allocation10_spill] sm:$0xff] %v1337_v42  ;;  %v1340_v43 = vld [vmem:[%s1218_s28 + $0xf8] sm:$0xff]  ;;  %v1343_v44 = vld [vmem:[%s1218_s28 + $0x70] sm:$0xff]  ;;  %v326_v48 = vld [vmem:[%s1527_s1] sm:$0xff] }
  0x46   : > { %309 = vadd.xlane.f32.xlu1 %v308_v16  ;;  %1545 = vst [vmem:[#allocation11_spill] sm:$0xff] %v1340_v43  ;;  %v1346_v45 = vld [vmem:[%s1218_s28 + $0x78] sm:$0xff]  ;;  %v323_v46 = vadd.f32 %v1340_v43, %v1337_v42  ;;  %v327_v49 = vld [vmem:[%s1527_s1 + $0x8] sm:$0xff]  ;;  %v328_v52 = vld [vmem:[%s1527_s1 + $0x10] sm:$0xff]  ;;  %s1001_s28 = scalar_lea.vmem %s1478_s11, 4096 }
  0x47   : > { %285 = vadd.xlane.f32.xlu0 %v284_v17  ;;  %v299_v47 = vadd.f32 %v1346_v45, %v1343_v44  ;;  %v903_v50 = vpack.c.bf16 %v327_v49, %v326_v48  ;;  %v329_v53 = vld [vmem:[%s1527_s1 + $0x18] sm:$0xff]  ;;  %v330_v55 = vld [vmem:[%s1527_s1 + $0x20] sm:$0xff]  ;;  %v331_v56 = vld [vmem:[%s1527_s1 + $0x28] sm:$0xff]  ;;  %v358_v17 = vand.u32 127, %v357_v10  ;;  %p1002_p6 = scmp.ne.s32.totalorder %s1478_s11, %s1001_s28  ;;  %p1009_p10 = scmp.lt.s32.totalorder %s1007_s14, %s1001_s28 }
  0x48   : > { %v906_v54 = vpack.c.bf16 %v329_v53, %v328_v52  ;;  %v909_v57 = vpack.c.bf16 %v331_v56, %v330_v55  ;;  %v332_v58 = vld [vmem:[%s1527_s1 + $0x30] sm:$0xff]  ;;  %v333_v59 = vld [vmem:[%s1527_s1 + $0x38] sm:$0xff] }
  0x49   : > { %904 = vmatpush3.bf16.msra.mxu0 %v903_v50  ;;  %v912_v60 = vpack.c.bf16 %v333_v59, %v332_v58  ;;  %v391_v48 = vadd.s32 4294967256, %v358_v17  ;;  %v398_v50 = vadd.s32 4294967248, %v358_v17  ;;  %v405_v58 = vadd.s32 4294967240, %v358_v17  ;;  %p1003_p12 = pnand %p1002_p6, %p1550_p11  ;;  %p1010_p0 = por %p1009_p10, %p1008_p8 }
  0x4a   : > { %312 = vadd.xlane.f32.xlu1 %v311_v22  ;;  %905 = vmatprep.subr.bf16.mxu0 %v1072_v51 }
  0x4b   : > { %288 = vadd.xlane.f32.xlu0 %v287_v23  ;;  %v363_v23 = vadd.s32 4294967288, %v358_v17  ;;  %p1004_p13 = pneg %p1003_p12 }
  0x4d   : > { %907 = vmatpush3.bf16.msra.mxu0 %v906_v54  ;;  %p1011_p2 = pnand %p1010_p0, %p1004_p13 }
  0x4e   : > { %315 = vadd.xlane.f32.xlu1 %v314_v28  ;;  %908 = vmatprep.subr.bf16.mxu0 %v1072_v51 }
  0x4f   : > { %291 = vadd.xlane.f32.xlu0 %v290_v29  ;;  %v370_v29 = vadd.s32 4294967280, %v358_v17 }
  0x51   : > { %910 = vmatpush3.bf16.msra.mxu0 %v909_v57 }
  0x52   : > { %318 = vadd.xlane.f32.xlu1 %v317_v34  ;;  %911 = vmatprep.subr.bf16.mxu0 %v1072_v51  ;;  %v1376_v34 = vshrl.u32 %v357_v10, 7 }
  0x53   : > { %294 = vadd.xlane.f32.xlu0 %v293_v35  ;;  %v377_v35 = vadd.s32 4294967272, %v358_v17 }
  0x54   : > { %v373_v49 = vsub.s32 %v370_v29, %v1376_v34  ;;  %v361_v51 = vsub.s32 %v358_v17, %v1376_v34  ;;  %v394_v56 = vsub.s32 %v391_v48, %v1376_v34  ;;  %v401_v61 = vsub.s32 %v398_v50, %v1376_v34 }
  0x55   : > { %913 = vmatpush3.bf16.msra.mxu0 %v912_v60  ;;  %v380_v52 = vsub.s32 %v377_v35, %v1376_v34 }
  0x56   : > { %321 = vadd.xlane.f32.xlu1 %v320_v40  ;;  %v384_v40 = vadd.s32 4294967264, %v358_v17 }
  0x57   : > { %297 = vadd.xlane.f32.xlu0 %v296_v41 }
  0x58   : > { %v387_v53 = vsub.s32 %v384_v40, %v1376_v34 }
  0x5a   : > { %324 = vadd.xlane.f32.xlu1 %v323_v46  ;;  %v366_v46 = vsub.s32 %v363_v23, %v1376_v34 }
  0x5b   : > { %300 = vadd.xlane.f32.xlu0 %v299_v47 }
  0xcb   : > { %v304_v62 = vpop.xlane.xlu1 %303 }
  0xcc   : > { %v280_v63 = vpop.xlane.xlu0 %279  ;;  %v415_v10 = vrot.slane %v304_v62, %v361_v51 }
  0xcd   : > { %v362_v35 = vrot.slane %v280_v63, %v361_v51 }
  0xcf   : > { %v307_v3 = vpop.xlane.xlu1 %306 }
  0xd0   : > { %v283_v7 = vpop.xlane.xlu0 %282  ;;  %v419_v55 = vrot.slane %v307_v3, %v366_v46 }
  0xd1   : > { %v367_v59 = vrot.slane %v283_v7, %v366_v46  ;;  %v408_v7 = vsub.s32 %v405_v58, %v1376_v34 }
  0xd2   : > { %v420_v3 = vsel %vm368_vm1, %v419_v55, %v415_v10  ;;  %v853_v10 = vld [vmem:[%s1530_s4] ss:$0 sm:$0xff] }
  0xd3   : > { %v310_v11 = vpop.xlane.xlu1 %309 }
  0xd4   : > { %v286_v16 = vpop.xlane.xlu0 %285  ;;  %v424_v60 = vrot.slane %v310_v11, %v373_v49  ;;  %v369_v11 = vsel %vm368_vm1, %v367_v59, %v362_v35 }
  0xd5   : > { %v374_v23 = vrot.slane %v286_v16, %v373_v49 }
  0xd6   : > { %v425_v17 = vsel %vm375_vm2, %v424_v60, %v420_v3 }
  0xd7   : > { %v313_v22 = vpop.xlane.xlu1 %312 }
  0xd8   : > { %v289_v28 = vpop.xlane.xlu0 %288  ;;  %v429_v29 = vrot.slane %v313_v22, %v380_v52  ;;  %v376_v22 = vsel %vm375_vm2, %v374_v23, %v369_v11 }
  0xd9   : > { %v381_v43 = vrot.slane %v289_v28, %v380_v52 }
  0xda   : > { %v430_v63 = vsel %vm382_vm3, %v429_v29, %v425_v17 }
  0xdb   : > { %v316_v41 = vpop.xlane.xlu1 %315 }
  0xdc   : > { %v292_v47 = vpop.xlane.xlu0 %291  ;;  %v434_v42 = vrot.slane %v316_v41, %v387_v53  ;;  %v383_v41 = vsel %vm382_vm3, %v381_v43, %v376_v22 }
  0xdd   : > { %v388_v31 = vrot.slane %v292_v47, %v387_v53 }
  0xde   : > { %v435_v46 = vsel %vm389_vm4, %v434_v42, %v430_v63  ;;  %v527_v42 = vld [vmem:[%s1529_s3] sm:$0xf] }
  0xdf   : > { %v319_v54 = vpop.xlane.xlu1 %318  ;;  %v390_v49 = vsel %vm389_vm4, %v388_v31, %v383_v41  ;;  %898 = vmatpush3.msk.msra.mxu1 %vm539_vm10, %v527_v42  ;;  %v851_v31 = vld [vmem:[%s1528_s2] ss:$0 sm:$0xff] }
  0xe0   : > { %v295_v57 = vpop.xlane.xlu0 %294  ;;  %v439_v48 = vrot.slane %v319_v54, %v394_v56 }
  0xe1   : > { %v395_v62 = vrot.slane %v295_v57, %v394_v56 }
  0xe2   : > { %v440_v50 = vsel %vm396_vm5, %v439_v48, %v435_v46 }
  0xe3   : > { %v322_v40 = vpop.xlane.xlu1 %321  ;;  %v397_v53 = vsel %vm396_vm5, %v395_v62, %v390_v49  ;;  %v656_v62 = vsub.s32 1, %v1376_v34 }
  0xe4   : > { %v298_v30 = vpop.xlane.xlu0 %297  ;;  %v444_v16 = vrot.slane %v322_v40, %v401_v61 }
  0xe5   : > { %v402_v28 = vrot.slane %v298_v30, %v401_v61 }
  0xe6   : > { %v445_v54 = vsel %vm403_vm6, %v444_v16, %v440_v50 }
  0xe7   : > { %v325_v47 = vpop.xlane.xlu1 %324  ;;  %v404_v56 = vsel %vm403_vm6, %v402_v28, %v397_v53 }
  0xe8   : > { %v449_v51 = vrot.slane %v325_v47, %v408_v7  ;;  %v301_v52 = vpop.xlane.xlu0 %300 }
  0xe9   : > { %v409_v55 = vrot.slane %v301_v52, %v408_v7  ;;  %v621_v7 = vsub.s32 0, %v1376_v34 }
  0xea   : > { %v450_v57 = vsel %vm410_vm7, %v449_v51, %v445_v54 }
  0xeb   : > { %v411_v30 = vsel %vm410_vm7, %v409_v55, %v404_v56 }
  0xec   : > { %v452_v43 = vsel %vm451_vm8, %v450_v57, %v411_v30 }
  0xed   : > { %895 = vmatmul.mubr.msk.f32.vlgmr.msra.gmra.mrb[0].mxu0 %vm453_vm9, %v452_v43 }
 0x1c0   : > { %v522_v58 = vpop.f32.mrb[0].mxu0 }
 0x1c1   : > { %v523_v59 = vadd.f32 %v851_v31, %v522_v58  ;;  %v896_v60 = vpop.f32.mrb[1].mxu0  ;;  %v1546_v31 = vld [vmem:[#allocation8_spill] sm:$0xff] }
 0x1c3   : > { %v526_v61 = vmax.f32 %v523_v59, 0.0  ;;  %v1547_v59 = vld [vmem:[#allocation9_spill] sm:$0xff] }
 0x1c5   : > { %900 = vmatmul.mubr.msk.f32.vlgmr.msra.gmra.mrb[0].mxu1 %vm535_vm11, %v526_v61 }
 0x298   : > { %v609_v23 = vpop.f32.mrb[0].mxu1 }
 0x299   : > { %v610_v29 = vadd.f32 %v853_v10, %v609_v23  ;;  %v901_v35 = vpop.f32.mrb[1].mxu1 }
 0x29b   : > { %v856_v40 = vmul.f32 -1.442695, %v610_v29 }
 0x29d   : > { %967 = vpow2.f32 %v856_v40 }
 0x2a7   : > { %v968_v3 = vpop.eup %967 }
 0x2a8   : > { %v616_v48 = vadd.f32 1.0, %v968_v3 }
 0x2aa   : > { %969 = vrcp.f32 %v616_v48 }
 0x2b4   : > { %v970_v11 = vpop.eup %969 }
 0x2b5   : > { %v622_v17 = vrot.slane %v970_v11, %v621_v7  ;;  %v657_v16 = vrot.slane %v970_v11, %v656_v62 }
 0x2b7   : > { %628 = vbcast.lane.b32.xlu1 %v622_v17, 264  ;;  %624 = vbcast.lane.b32.xlu0 %v622_v17, 256 }
 0x2bb   : > { %632 = vbcast.lane.b32.xlu1 %v622_v17, 272  ;;  %640 = vbcast.lane.b32.xlu0 %v622_v17, 288 }
 0x2bf   : > { %636 = vbcast.lane.b32.xlu1 %v622_v17, 280  ;;  %648 = vbcast.lane.b32.xlu0 %v622_v17, 304 }
 0x2c3   : > { %644 = vbcast.lane.b32.xlu1 %v622_v17, 296  ;;  %659 = vbcast.lane.b32.xlu0 %v657_v16, 256 }
 0x2c7   : > { %652 = vbcast.lane.b32.xlu1 %v622_v17, 312  ;;  %667 = vbcast.lane.b32.xlu0 %v657_v16, 272 }
 0x2cb   : > { %663 = vbcast.lane.b32.xlu1 %v657_v16, 264  ;;  %675 = vbcast.lane.b32.xlu0 %v657_v16, 288 }
 0x2cf   : > { %671 = vbcast.lane.b32.xlu1 %v657_v16, 280  ;;  %683 = vbcast.lane.b32.xlu0 %v657_v16, 304 }
 0x2d3   : > { %679 = vbcast.lane.b32.xlu1 %v657_v16, 296 }
 0x2d7   : > { %687 = vbcast.lane.b32.xlu1 %v657_v16, 312 }
 0x329   : > { %v629_v22 = vpop.permute.xlu1 %628  ;;  %v625_v63 = vpop.permute.xlu0 %624 }
 0x32a   : > { %v691_v28 = vmul.f32 %v629_v22, %v1247_v8  ;;  %v692_v34 = vmul.f32 %v629_v22, %v1250_v9  ;;  %v689_v41 = vmul.f32 %v625_v63, %v1231_v2  ;;  %v690_v46 = vmul.f32 %v625_v63, %v1236_v4 }
 0x32c   : > { %723 = vst [vmem:[%s1413_s10 + $0x10] sm:$0xff] %v691_v28  ;;  %724 = vst [vmem:[%s1413_s10 + $0x18] sm:$0xff] %v692_v34 }
 0x32d   : > { %721 = vst [vmem:[%s1413_s10] sm:$0xff] %v689_v41  ;;  %722 = vst [vmem:[%s1413_s10 + $0x8] sm:$0xff] %v690_v46  ;;  %v633_v8 = vpop.permute.xlu1 %632  ;;  %v641_v2 = vpop.permute.xlu0 %640 }
 0x32e   : > { %v693_v4 = vmul.f32 %v633_v8, %v1263_v14  ;;  %v694_v9 = vmul.f32 %v633_v8, %v1266_v15  ;;  %v697_v47 = vmul.f32 %v641_v2, %v1295_v26  ;;  %v698_v49 = vmul.f32 %v641_v2, %v1298_v27 }
 0x330   : > { %725 = vst [vmem:[%s1413_s10 + $0x20] sm:$0xff] %v693_v4  ;;  %726 = vst [vmem:[%s1413_s10 + $0x28] sm:$0xff] %v694_v9 }
 0x331   : > { %729 = vst [vmem:[%s1413_s10 + $0x40] sm:$0xff] %v697_v47  ;;  %730 = vst [vmem:[%s1413_s10 + $0x48] sm:$0xff] %v698_v49  ;;  %v637_v50 = vpop.permute.xlu1 %636  ;;  %v649_v51 = vpop.permute.xlu0 %648 }
 0x332   : > { %v695_v52 = vmul.f32 %v637_v50, %v1279_v20  ;;  %v696_v14 = vmul.f32 %v637_v50, %v1282_v21  ;;  %v701_v15 = vmul.f32 %v649_v51, %v1327_v38  ;;  %v702_v26 = vmul.f32 %v649_v51, %v1330_v39 }
 0x334   : > { %727 = vst [vmem:[%s1413_s10 + $0x30] sm:$0xff] %v695_v52  ;;  %728 = vst [vmem:[%s1413_s10 + $0x38] sm:$0xff] %v696_v14 }
 0x335   : > { %733 = vst [vmem:[%s1413_s10 + $0x60] sm:$0xff] %v701_v15  ;;  %734 = vst [vmem:[%s1413_s10 + $0x68] sm:$0xff] %v702_v26  ;;  %v645_v27 = vpop.permute.xlu1 %644  ;;  %v660_v53 = vpop.permute.xlu0 %659 }
 0x336   : > { %v699_v54 = vmul.f32 %v645_v27, %v1311_v32  ;;  %v700_v20 = vmul.f32 %v645_v27, %v1314_v33  ;;  %v705_v21 = vmul.f32 %v660_v53, %v1225_v0  ;;  %v706_v38 = vmul.f32 %v660_v53, %v1228_v1 }
 0x338   : > { %731 = vst [vmem:[%s1413_s10 + $0x50] sm:$0xff] %v699_v54  ;;  %732 = vst [vmem:[%s1413_s10 + $0x58] sm:$0xff] %v700_v20 }
 0x339   : > { %737 = vst [vmem:[%s1413_s10 + $0x80] sm:$0xff] %v705_v21  ;;  %738 = vst [vmem:[%s1413_s10 + $0x88] sm:$0xff] %v706_v38  ;;  %v653_v39 = vpop.permute.xlu1 %652  ;;  %v668_v55 = vpop.permute.xlu0 %667 }
 0x33a   : > { %v703_v56 = vmul.f32 %v653_v39, %v1343_v44  ;;  %v704_v32 = vmul.f32 %v653_v39, %v1346_v45  ;;  %v709_v33 = vmul.f32 %v668_v55, %v1257_v12  ;;  %v710_v0 = vmul.f32 %v668_v55, %v1260_v13 }
 0x33c   : > { %735 = vst [vmem:[%s1413_s10 + $0x70] sm:$0xff] %v703_v56  ;;  %736 = vst [vmem:[%s1413_s10 + $0x78] sm:$0xff] %v704_v32 }
 0x33d   : > { %741 = vst [vmem:[%s1413_s10 + $0xa0] sm:$0xff] %v709_v33  ;;  %742 = vst [vmem:[%s1413_s10 + $0xa8] sm:$0xff] %v710_v0  ;;  %v664_v1 = vpop.permute.xlu1 %663  ;;  %v676_v57 = vpop.permute.xlu0 %675 }
 0x33e   : > { %v707_v30 = vmul.f32 %v664_v1, %v1239_v5  ;;  %v708_v44 = vmul.f32 %v664_v1, %v1242_v6  ;;  %v713_v45 = vmul.f32 %v676_v57, %v1289_v24  ;;  %v714_v12 = vmul.f32 %v676_v57, %v1292_v25 }
 0x340   : > { %739 = vst [vmem:[%s1413_s10 + $0x90] sm:$0xff] %v707_v30  ;;  %740 = vst [vmem:[%s1413_s10 + $0x98] sm:$0xff] %v708_v44 }
 0x341   : > { %745 = vst [vmem:[%s1413_s10 + $0xc0] sm:$0xff] %v713_v45  ;;  %746 = vst [vmem:[%s1413_s10 + $0xc8] sm:$0xff] %v714_v12  ;;  %v672_v13 = vpop.permute.xlu1 %671  ;;  %v684_v43 = vpop.permute.xlu0 %683 }
 0x342   : > { %v711_v5 = vmul.f32 %v672_v13, %v1273_v18  ;;  %v712_v42 = vmul.f32 %v672_v13, %v1276_v19  ;;  %v717_v6 = vmul.f32 %v684_v43, %v1321_v36  ;;  %v718_v24 = vmul.f32 %v684_v43, %v1324_v37  ;;  %v1548_v19 = vld [vmem:[#allocation10_spill] sm:$0xff]  ;;  %v1549_v37 = vld [vmem:[#allocation11_spill] sm:$0xff] }
 0x344   : > { %743 = vst [vmem:[%s1413_s10 + $0xb0] sm:$0xff] %v711_v5  ;;  %744 = vst [vmem:[%s1413_s10 + $0xb8] sm:$0xff] %v712_v42 }
 0x345   : > { %749 = vst [vmem:[%s1413_s10 + $0xe0] sm:$0xff] %v717_v6  ;;  %750 = vst [vmem:[%s1413_s10 + $0xe8] sm:$0xff] %v718_v24  ;;  %v680_v25 = vpop.permute.xlu1 %679 }
 0x346   : > { %v715_v58 = vmul.f32 %v680_v25, %v1546_v31  ;;  %v716_v60 = vmul.f32 %v680_v25, %v1547_v59 }
 0x348   : > { %747 = vst [vmem:[%s1413_s10 + $0xd0] sm:$0xff] %v715_v58  ;;  %748 = vst [vmem:[%s1413_s10 + $0xd8] sm:$0xff] %v716_v60 }
 0x349   : > { %v688_v18 = vpop.permute.xlu1 %687 }
 0x34a   : > { %v719_v36 = vmul.f32 %v688_v18, %v1548_v19  ;;  %v720_v61 = vmul.f32 %v688_v18, %v1549_v37 }
 0x34c   : > { %751 = vst [vmem:[%s1413_s10 + $0xf0] sm:$0xff] %v719_v36  ;;  %752 = vst [vmem:[%s1413_s10 + $0xf8] sm:$0xff] %v720_v61 }
 0x34d   : > { %1014 = shalt.err (!%p1011_p2)
}
 0x34e   : > { %s1015_s15 = scalar_lea.hbm %s1476_s26, 4096  ;;  %s1019_s7 = scalar_lea.hbm %s1531_s5, 8192 }
 0x34f   : > { %p1016_p4 = scmp.ne.s32.totalorder %s1476_s26, %s1015_s15  ;;  %p1020_p9 = scmp.lt.u32.totalorder %s1476_s26, %s1531_s5 }
 0x350   : > { %p1021_p1 = scmp.lt.u32.totalorder %s1019_s7, %s1015_s15  ;;  %p1023_p6 = scmp.lt.u32.totalorder %s1015_s15, %s1476_s26 }
 0x351   : > { %p1017_p5 = pnand %p1016_p4, %p1550_p11 }
 0x352   : > { %p1022_p3 = por %p1021_p1, %p1020_p9 }
 0x353   : > { %p1018_p7 = pneg %p1017_p5 }
 0x354   : > { %p1024_p12 = por %p1023_p6, %p1022_p3 }
 0x356   : > { %p1025_p13 = pnand %p1024_p12, %p1018_p7 }
 0x358   : > { %1028 = shalt.err (!%p1025_p13)
}
 0x359   : > { %s1076_s25 = smov 256   ;;  %s1077_s13 = smov 16  }
 0x35a   : > { %916 = dma.vmem_to_hbm [thread:$0]  (%p1550_p11), %s1478_s11, 4096, %s1476_s26, %s754_s22, %s1076_s25, %s1076_s25, %s1077_s13  }
 0x35b PF: > { %s783_s17 = sand.u32 1, %s1055_s18   ;;  %p1551_p8 = scmp.ne.s32.totalorder %s1540_s6, 0 }
 0x35c   : > { %p1552_p10 = scmp.ge.s32.totalorder %s1067_s21, 2  ;;  %s784_s28 = scalar_lea.sflag [#allocation4], %s783_s17 }
 0x35e   : > { %p923_p0 = pnand %p1552_p10, %p1551_p8 }
 0x360   : > { %1050 = dma.done.wait (!%p923_p0), %s784_s28, 4096  }
 0x361   : > { %1052 = vsyncadd (!%p923_p0), %s784_s28, 4294963200  ;;  %p18_p2 = scmp.ge.s32.totalorder %s1133_s24, 4   ;;  %s1553_s18 = smov %s1059_s19 }
 0x362   : > { %s1554_s19 = smov %s1063_s20  ;;  %s1555_s20 = smov %s1145_s27 }
 0x363   : > { %s1556_s21 = smov %s1133_s24  ;;  %20 = sbr.rel (!%p18_p2) target bundleno = 5 (0x5), region = 85 }
 0x36a   :  { %789 = vsyncpa [#allocation3], 1 }
 0x36b   :  { %791 = vsyncpa [#allocation3 + $0x1], 1 }
 0x36c   :  { %792 = vsyncpa [#allocation4], 1 }
 0x36d   :  { %794 = vsyncpa [#allocation4 + $0x1], 1 }

</bundles_post_ra>
